<compile_context>
chip_gen: v7x
topology: tpu7x:2x2x1
jax: 0.10.0
libtpu: 0.0.40
codegen_flags: <defaults>
</compile_context>

<pallas_src>
import functools

import jax
import jax.numpy as jnp
from jax.experimental import pallas as pl
from jax.experimental.pallas import tpu as pltpu


# ------------------------------ constants ---------------------------------- #

LANE = 128
D_OMIC = 50            # per-omics input width
D_COMB = 48            # 3 * 16 = x_combined width
N_OUT = 5              # logits width

BR_PITCH = 64                       # per-branch W1 row pitch (bf16 tile aligned)
W1G_OFF = 0
W1D_OFF = BR_PITCH                  # 64
W1M_OFF = 2 * BR_PITCH              # 128
W2_OFF = 3 * BR_PITCH               # 192
WC1_OFF = W2_OFF + LANE             # 320
WC2_OFF = WC1_OFF + LANE            # 448
W_ROWS = WC2_OFF + LANE             # 576


# ----------------------------- Pallas kernel ------------------------------- #

def multiomics_kernel(xg_ref, xd_ref, xm_ref, w_ref, b_ref, logits_ref, comb_ref):
    # xg/xd/xm_ref : (TB, 50) f32 batch tiles of the three omics inputs
    # w_ref        : (576, 128) bf16 packed weights (VMEM resident across steps)
    # b_ref        : (8, 128)   f32  packed biases  (VMEM resident across steps)
    # logits_ref   : (TB, 5)  f32
    # comb_ref     : (TB, 48) f32
    f32 = jnp.float32
    bf16 = jnp.bfloat16

    xg = xg_ref[...].astype(bf16)
    xd = xd_ref[...].astype(bf16)
    xm = xm_ref[...].astype(bf16)

    w1g = w_ref[W1G_OFF:W1G_OFF + D_OMIC, :]   # (50, 128)  gene  L1 (lanes 0:32)
    w1d = w_ref[W1D_OFF:W1D_OFF + D_OMIC, :]   # (50, 128)  dna   L1 (lanes 32:64)
    w1m = w_ref[W1M_OFF:W1M_OFF + D_OMIC, :]   # (50, 128)  mirna L1 (lanes 64:96)
    w2 = w_ref[W2_OFF:W2_OFF + LANE, :]        # (128,128)  block-diag branch L2
    wc1 = w_ref[WC1_OFF:WC1_OFF + LANE, :]     # (128,128)  head L1
    wc2 = w_ref[WC2_OFF:WC2_OFF + LANE, :]     # (128,128)  head L2 (lanes 0:5)

    b1 = b_ref[0:1, :]
    b2 = b_ref[1:2, :]
    bc1 = b_ref[2:3, :]
    bc2 = b_ref[3:4, :]

    # Branch layer 1, all three branches fused into disjoint lane bands.
    h1 = (jnp.dot(xg, w1g, preferred_element_type=f32)
          + jnp.dot(xd, w1d, preferred_element_type=f32)
          + jnp.dot(xm, w1m, preferred_element_type=f32) + b1)
    h1 = jnp.maximum(h1, 0.0).astype(bf16)                       # (TB,128), 0:96 live

    # Branch layer 2 (block-diagonal): lanes 0:48 == x_combined, rest exactly 0.
    comb = jnp.maximum(jnp.dot(h1, w2, preferred_element_type=f32) + b2, 0.0)
    comb_bf = comb.astype(bf16)

    # Combined head.
    h2 = jnp.maximum(jnp.dot(comb_bf, wc1, preferred_element_type=f32) + bc1, 0.0)
    h2 = h2.astype(bf16)                                         # (TB,128), 0:32 live
    logits = jnp.dot(h2, wc2, preferred_element_type=f32) + bc2  # lanes 0:5 live

    comb_ref[...] = comb[:, :D_COMB]
    logits_ref[...] = logits[:, :N_OUT]


# --------------------------- parameter packing ----------------------------- #

def pack_params(params):
    """One-time packing of PyTorch-layout params into a bf16 weight slab and an
    f32 bias slab.  Weights are pre-transposed to (in, out) so y = x @ W + b
    matches nn.Linear; all padding rows/lanes are exactly zero."""
    f32 = jnp.float32

    def T(name):  # (out, in) -> (in, out)
        return jnp.asarray(params[name], f32).T

    w = jnp.zeros((W_ROWS, LANE), f32)
    # Branch layer 1: each (50, 32) block on its own 64-row pitch / 32-lane band.
    w = w.at[W1G_OFF:W1G_OFF + D_OMIC, 0:32].set(T("gene_w1"))
    w = w.at[W1D_OFF:W1D_OFF + D_OMIC, 32:64].set(T("dna_w1"))
    w = w.at[W1M_OFF:W1M_OFF + D_OMIC, 64:96].set(T("mirna_w1"))
    # Branch layer 2 block-diagonal (96 -> 48).
    w = w.at[W2_OFF + 0:W2_OFF + 32, 0:16].set(T("gene_w2"))
    w = w.at[W2_OFF + 32:W2_OFF + 64, 16:32].set(T("dna_w2"))
    w = w.at[W2_OFF + 64:W2_OFF + 96, 32:48].set(T("mirna_w2"))
    # Combined head.
    w = w.at[WC1_OFF:WC1_OFF + D_COMB, 0:32].set(T("comb_w1"))
    w = w.at[WC2_OFF:WC2_OFF + 32, 0:N_OUT].set(T("comb_w2"))
    w_slab = w.astype(jnp.bfloat16)

    b = jnp.zeros((8, LANE), f32)
    b = b.at[0, 0:32].set(jnp.asarray(params["gene_b1"], f32))
    b = b.at[0, 32:64].set(jnp.asarray(params["dna_b1"], f32))
    b = b.at[0, 64:96].set(jnp.asarray(params["mirna_b1"], f32))
    b = b.at[1, 0:16].set(jnp.asarray(params["gene_b2"], f32))
    b = b.at[1, 16:32].set(jnp.asarray(params["dna_b2"], f32))
    b = b.at[1, 32:48].set(jnp.asarray(params["mirna_b2"], f32))
    b = b.at[2, 0:32].set(jnp.asarray(params["comb_b1"], f32))
    b = b.at[3, 0:N_OUT].set(jnp.asarray(params["comb_b2"], f32))
    return w_slab, b


# ------------------------------ JAX wrapper -------------------------------- #

def _round_up(x, m):
    return ((x + m - 1) // m) * m


@functools.partial(jax.jit, static_argnames=("batch_tile",))
def multiomics_forward(x_gene, x_dna, x_mirna, w_slab, b_slab, *, batch_tile=None):
    B = x_gene.shape[0]
    if batch_tile is None:
        if B <= 16:
            batch_tile = _round_up(max(B, 1), 8)
        else:
            # >= 2 grid steps so both v7x TensorCores get work; multiple of 256
            # when large for clean MXU M-tiling; capped at 1024 (sweepable).
            target = pl.cdiv(B, 2)
            batch_tile = min(1024, _round_up(target, 256 if target >= 256 else 8))
    TB = batch_tile
    n_steps = pl.cdiv(B, TB)

    xg = x_gene.astype(jnp.float32)
    xd = x_dna.astype(jnp.float32)
    xm = x_mirna.astype(jnp.float32)

    # VMEM budget: double-buffered x/out tiles (lane-padded to 128), resident
    # weight/bias slabs, plus the f32/bf16 intermediates; clamped for v7x (64 MiB
    # physical) with headroom.
    per_row = 2 * (3 * LANE * 4) + 2 * (2 * LANE * 4) + 4 * LANE * 4 + 3 * LANE * 2
    vmem_bytes = int(min(48 << 20, max(16 << 20,
                                       TB * per_row + 4 * W_ROWS * LANE + (2 << 20))))

    flops = 2 * B * LANE * (3 * D_OMIC + 3 * LANE)
    bytes_accessed = (B * (3 * D_OMIC * 4 + (D_COMB + N_OUT) * 4)
                      + W_ROWS * LANE * 2 + 8 * LANE * 4)

    logits, comb = pl.pallas_call(
        multiomics_kernel,
        out_shape=(
            jax.ShapeDtypeStruct((B, N_OUT), jnp.float32),
            jax.ShapeDtypeStruct((B, D_COMB), jnp.float32),
        ),
        grid_spec=pltpu.PrefetchScalarGridSpec(
            num_scalar_prefetch=0,
            grid=(n_steps,),
            in_specs=[
                pl.BlockSpec((TB, D_OMIC), lambda i: (i, 0)),    # x_gene tile
                pl.BlockSpec((TB, D_OMIC), lambda i: (i, 0)),    # x_dna tile
                pl.BlockSpec((TB, D_OMIC), lambda i: (i, 0)),    # x_mirna tile
                pl.BlockSpec((W_ROWS, LANE), lambda i: (0, 0)),  # resident weights
                pl.BlockSpec((8, LANE), lambda i: (0, 0)),       # resident biases
            ],
            out_specs=[
                pl.BlockSpec((TB, N_OUT), lambda i: (i, 0)),     # logits
                pl.BlockSpec((TB, D_COMB), lambda i: (i, 0)),    # x_combined
            ],
        ),
        compiler_params=pltpu.CompilerParams(
            dimension_semantics=("parallel",),
            vmem_limit_bytes=vmem_bytes,
        ),
        cost_estimate=pl.CostEstimate(
            flops=int(flops), transcendentals=0, bytes_accessed=int(bytes_accessed)),
    )(xg, xd, xm, w_slab, b_slab)

    return logits, comb


# --------------------------- parameter init -------------------------------- #

def init_params(key):
    """Deterministic PyTorch-style init: U(-1/sqrt(fan_in), 1/sqrt(fan_in))."""
    params = {}

    def linear_init(key, out_f, in_f):
        k1, k2 = jax.random.split(key)
        bound = 1.0 / jnp.sqrt(in_f)
        w = jax.random.uniform(k1, (out_f, in_f), jnp.float32, -bound, bound)
        b = jax.random.uniform(k2, (out_f,), jnp.float32, -bound, bound)
        return w, b

    keys = jax.random.split(key, 8)
    params["gene_w1"], params["gene_b1"] = linear_init(keys[0], 32, 50)
    params["gene_w2"], params["gene_b2"] = linear_init(keys[1], 16, 32)
    params["dna_w1"], params["dna_b1"] = linear_init(keys[2], 32, 50)
    params["dna_w2"], params["dna_b2"] = linear_init(keys[3], 16, 32)
    params["mirna_w1"], params["mirna_b1"] = linear_init(keys[4], 32, 50)
    params["mirna_w2"], params["mirna_b2"] = linear_init(keys[5], 16, 32)
    params["comb_w1"], params["comb_b1"] = linear_init(keys[6], 32, 48)
    params["comb_w2"], params["comb_b2"] = linear_init(keys[7], 5, 32)
    return params


# ------------------------- pure-JAX references ------------------------------ #

def reference_forward(x_gene, x_dna, x_mirna, p, *, emulate_bf16=False):
    f32 = jnp.float32

    def q(a):
        a = jnp.asarray(a, f32)
        return a.astype(jnp.bfloat16) if emulate_bf16 else a

    def lin(x, wname, bname):
        return (jnp.dot(q(x), q(p[wname]).T, preferred_element_type=f32)
                + jnp.asarray(p[bname], f32))

    def branch(x, pre):
        h = jnp.maximum(lin(x, pre + "_w1", pre + "_b1"), 0.0)
        return jnp.maximum(lin(h, pre + "_w2", pre + "_b2"), 0.0)

    g = branch(x_gene, "gene")
    d = branch(x_dna, "dna")
    m = branch(x_mirna, "mirna")
    comb = jnp.concatenate([g, d, m], axis=1)
    h = jnp.maximum(lin(comb, "comb_w1", "comb_b1"), 0.0)
    out = lin(h, "comb_w2", "comb_b2")
    return out, comb


# --------------------------------- main ------------------------------------ #

if __name__ == "__main__":
    key = jax.random.PRNGKey(0)
    kp, kg, kd, km = jax.random.split(key, 4)

    batch = 2
    x_gene = jax.random.normal(kg, (batch, 50), jnp.float32)
    x_dna = jax.random.normal(kd, (batch, 50), jnp.float32)
    x_mirna = jax.random.normal(km, (batch, 50), jnp.float32)

    params = init_params(kp)
    # One-time (hoisted) weight packing: transpose, fuse, pad, bf16 cast.
    w_slab, b_slab = pack_params(params)

    out, comb = multiomics_forward(x_gene, x_dna, x_mirna, w_slab, b_slab)
    out, comb = jax.block_until_ready((out, comb))
    assert out.shape == (batch, 5) and comb.shape == (batch, 48)

    # Exact-ish check against a bf16-operand / f32-accumulate reference.
    ref_out_bf, ref_comb_bf = reference_forward(
        x_gene, x_dna, x_mirna, params, emulate_bf16=True)
    assert jnp.allclose(out, ref_out_bf, atol=1e-3, rtol=1e-3), float(
        jnp.max(jnp.abs(out - ref_out_bf)))
    assert jnp.allclose(comb, ref_comb_bf, atol=1e-3, rtol=1e-3), float(
        jnp.max(jnp.abs(comb - ref_comb_bf)))

    # Sanity check against the full-f32 reference (loose tolerance for bf16 ops).
    ref_out, ref_comb = reference_forward(x_gene, x_dna, x_mirna, params)
    assert jnp.allclose(out, ref_out, atol=5e-2, rtol=5e-2), float(
        jnp.max(jnp.abs(out - ref_out)))
    assert jnp.allclose(comb, ref_comb, atol=5e-2, rtol=5e-2), float(
        jnp.max(jnp.abs(comb - ref_comb)))

    print("KERNEL_OK")
</pallas_src>

<mosaic_0001>
module attributes {stable_mosaic.version = 11 : i64} {
  func.func @multiomics_kernel(%arg0: i32, %arg1: memref<8x50xf32, #tpu.memory_space<vmem>>, %arg2: memref<8x50xf32, #tpu.memory_space<vmem>>, %arg3: memref<8x50xf32, #tpu.memory_space<vmem>>, %arg4: memref<576x128xbf16, #tpu.memory_space<vmem>>, %arg5: memref<8x128xf32, #tpu.memory_space<vmem>>, %arg6: memref<8x5xf32, #tpu.memory_space<vmem>>, %arg7: memref<8x48xf32, #tpu.memory_space<vmem>>) attributes {dimension_semantics = [#tpu.dimension_semantics<parallel>], iteration_bounds = array<i64: 1>, scalar_prefetch = 0 : i64, scratch_operands = 0 : i64, tpu.core_type = #tpu.core_type<tc>, window_params = [{transform_indices = @transform_0, window_bounds = array<i64: 8, 50>}, {transform_indices = @transform_1, window_bounds = array<i64: 8, 50>}, {transform_indices = @transform_2, window_bounds = array<i64: 8, 50>}, {pipeline_mode = #tpu.pipeline_mode<synchronous>, transform_indices = @transform_3, window_bounds = array<i64: 576, 128>}, {pipeline_mode = #tpu.pipeline_mode<synchronous>, transform_indices = @transform_4, window_bounds = array<i64: 8, 128>}, {transform_indices = @transform_5, window_bounds = array<i64: 8, 5>}, {transform_indices = @transform_6, window_bounds = array<i64: 8, 48>}]} {
    %c0 = arith.constant 0 : index
    %c0_0 = arith.constant 0 : index
    %0 = vector.load %arg1[%c0, %c0_0] : memref<8x50xf32, #tpu.memory_space<vmem>>, vector<8x50xf32>
    %1 = arith.truncf %0 : vector<8x50xf32> to vector<8x50xbf16>
    %c0_1 = arith.constant 0 : index
    %c0_2 = arith.constant 0 : index
    %2 = vector.load %arg2[%c0_1, %c0_2] : memref<8x50xf32, #tpu.memory_space<vmem>>, vector<8x50xf32>
    %3 = arith.truncf %2 : vector<8x50xf32> to vector<8x50xbf16>
    %c0_3 = arith.constant 0 : index
    %c0_4 = arith.constant 0 : index
    %4 = vector.load %arg3[%c0_3, %c0_4] : memref<8x50xf32, #tpu.memory_space<vmem>>, vector<8x50xf32>
    %5 = arith.truncf %4 : vector<8x50xf32> to vector<8x50xbf16>
    %c0_5 = arith.constant 0 : index
    %c0_6 = arith.constant 0 : index
    %6 = vector.load %arg4[%c0_5, %c0_6] : memref<576x128xbf16, #tpu.memory_space<vmem>>, vector<50x128xbf16>
    %c64 = arith.constant 64 : index
    %c0_7 = arith.constant 0 : index
    %7 = vector.load %arg4[%c64, %c0_7] : memref<576x128xbf16, #tpu.memory_space<vmem>>, vector<50x128xbf16>
    %c128 = arith.constant 128 : index
    %c0_8 = arith.constant 0 : index
    %8 = vector.load %arg4[%c128, %c0_8] : memref<576x128xbf16, #tpu.memory_space<vmem>>, vector<50x128xbf16>
    %c192 = arith.constant 192 : index
    %c0_9 = arith.constant 0 : index
    %9 = vector.load %arg4[%c192, %c0_9] : memref<576x128xbf16, #tpu.memory_space<vmem>>, vector<128x128xbf16>
    %c320 = arith.constant 320 : index
    %c0_10 = arith.constant 0 : index
    %10 = vector.load %arg4[%c320, %c0_10] : memref<576x128xbf16, #tpu.memory_space<vmem>>, vector<128x128xbf16>
    %c448 = arith.constant 448 : index
    %c0_11 = arith.constant 0 : index
    %11 = vector.load %arg4[%c448, %c0_11] : memref<576x128xbf16, #tpu.memory_space<vmem>>, vector<128x128xbf16>
    %c0_12 = arith.constant 0 : index
    %c0_13 = arith.constant 0 : index
    %12 = vector.load %arg5[%c0_12, %c0_13] : memref<8x128xf32, #tpu.memory_space<vmem>>, vector<1x128xf32>
    %c1 = arith.constant 1 : index
    %c0_14 = arith.constant 0 : index
    %13 = vector.load %arg5[%c1, %c0_14] : memref<8x128xf32, #tpu.memory_space<vmem>>, vector<1x128xf32>
    %c2 = arith.constant 2 : index
    %c0_15 = arith.constant 0 : index
    %14 = vector.load %arg5[%c2, %c0_15] : memref<8x128xf32, #tpu.memory_space<vmem>>, vector<1x128xf32>
    %c3 = arith.constant 3 : index
    %c0_16 = arith.constant 0 : index
    %15 = vector.load %arg5[%c3, %c0_16] : memref<8x128xf32, #tpu.memory_space<vmem>>, vector<1x128xf32>
    %cst = arith.constant dense<0.000000e+00> : vector<8x128xf32>
    %16 = tpu.matmul %1, %6, %cst {dimension_numbers = #tpu.dot_dimension_numbers<[1], [0], [0], [1], [0, 0, 1, 1], [], []>} : vector<8x50xbf16>, vector<50x128xbf16>, vector<8x128xf32> -> vector<8x128xf32>
    %cst_17 = arith.constant dense<0.000000e+00> : vector<8x128xf32>
    %17 = tpu.matmul %3, %7, %cst_17 {dimension_numbers = #tpu.dot_dimension_numbers<[1], [0], [0], [1], [0, 0, 1, 1], [], []>} : vector<8x50xbf16>, vector<50x128xbf16>, vector<8x128xf32> -> vector<8x128xf32>
    %18 = arith.addf %16, %17 : vector<8x128xf32>
    %cst_18 = arith.constant dense<0.000000e+00> : vector<8x128xf32>
    %19 = tpu.matmul %5, %8, %cst_18 {dimension_numbers = #tpu.dot_dimension_numbers<[1], [0], [0], [1], [0, 0, 1, 1], [], []>} : vector<8x50xbf16>, vector<50x128xbf16>, vector<8x128xf32> -> vector<8x128xf32>
    %20 = arith.addf %18, %19 : vector<8x128xf32>
    %21 = vector.broadcast %12 : vector<1x128xf32> to vector<8x128xf32>
    %22 = arith.addf %20, %21 : vector<8x128xf32>
    %cst_19 = arith.constant 0.000000e+00 : f32
    %23 = vector.broadcast %cst_19 : f32 to vector<8x128xf32>
    %24 = arith.maximumf %22, %23 : vector<8x128xf32>
    %25 = arith.truncf %24 : vector<8x128xf32> to vector<8x128xbf16>
    %cst_20 = arith.constant dense<0.000000e+00> : vector<8x128xf32>
    %26 = tpu.matmul %25, %9, %cst_20 {dimension_numbers = #tpu.dot_dimension_numbers<[1], [0], [0], [1], [0, 0, 1, 1], [], []>} : vector<8x128xbf16>, vector<128x128xbf16>, vector<8x128xf32> -> vector<8x128xf32>
    %27 = vector.broadcast %13 : vector<1x128xf32> to vector<8x128xf32>
    %28 = arith.addf %26, %27 : vector<8x128xf32>
    %cst_21 = arith.constant 0.000000e+00 : f32
    %29 = vector.broadcast %cst_21 : f32 to vector<8x128xf32>
    %30 = arith.maximumf %28, %29 : vector<8x128xf32>
    %31 = arith.truncf %30 : vector<8x128xf32> to vector<8x128xbf16>
    %cst_22 = arith.constant dense<0.000000e+00> : vector<8x128xf32>
    %32 = tpu.matmul %31, %10, %cst_22 {dimension_numbers = #tpu.dot_dimension_numbers<[1], [0], [0], [1], [0, 0, 1, 1], [], []>} : vector<8x128xbf16>, vector<128x128xbf16>, vector<8x128xf32> -> vector<8x128xf32>
    %33 = vector.broadcast %14 : vector<1x128xf32> to vector<8x128xf32>
    %34 = arith.addf %32, %33 : vector<8x128xf32>
    %cst_23 = arith.constant 0.000000e+00 : f32
    %35 = vector.broadcast %cst_23 : f32 to vector<8x128xf32>
    %36 = arith.maximumf %34, %35 : vector<8x128xf32>
    %37 = arith.truncf %36 : vector<8x128xf32> to vector<8x128xbf16>
    %cst_24 = arith.constant dense<0.000000e+00> : vector<8x128xf32>
    %38 = tpu.matmul %37, %11, %cst_24 {dimension_numbers = #tpu.dot_dimension_numbers<[1], [0], [0], [1], [0, 0, 1, 1], [], []>} : vector<8x128xbf16>, vector<128x128xbf16>, vector<8x128xf32> -> vector<8x128xf32>
    %39 = vector.broadcast %15 : vector<1x128xf32> to vector<8x128xf32>
    %40 = arith.addf %38, %39 : vector<8x128xf32>
    %41 = vector.extract_strided_slice %30 {offsets = [0, 0], sizes = [8, 48], strides = [1, 1]} : vector<8x128xf32> to vector<8x48xf32>
    %c0_25 = arith.constant 0 : index
    %c0_26 = arith.constant 0 : index
    %42 = vector.load %arg7[%c0_25, %c0_26] : memref<8x48xf32, #tpu.memory_space<vmem>>, vector<8x48xf32>
    tpu.vector_store %arg7[%c0_25, %c0_26], %41 {strides = array<i32>} : memref<8x48xf32, #tpu.memory_space<vmem>>, vector<8x48xf32>,
    %43 = vector.extract_strided_slice %40 {offsets = [0, 0], sizes = [8, 5], strides = [1, 1]} : vector<8x128xf32> to vector<8x5xf32>
    %c0_27 = arith.constant 0 : index
    %c0_28 = arith.constant 0 : index
    %44 = vector.load %arg6[%c0_27, %c0_28] : memref<8x5xf32, #tpu.memory_space<vmem>>, vector<8x5xf32>
    tpu.vector_store %arg6[%c0_27, %c0_28], %43 {strides = array<i32>} : memref<8x5xf32, #tpu.memory_space<vmem>>, vector<8x5xf32>,
    return
  }
  func.func @transform_0(%arg0: i32) -> (i32, i32) {
    %c0_i32 = arith.constant 0 : i32
    %c0_i32_0 = arith.constant 0 : i32
    return %arg0, %c0_i32 : i32, i32
  }
  func.func @transform_1(%arg0: i32) -> (i32, i32) {
    %c0_i32 = arith.constant 0 : i32
    %c0_i32_0 = arith.constant 0 : i32
    return %arg0, %c0_i32 : i32, i32
  }
  func.func @transform_2(%arg0: i32) -> (i32, i32) {
    %c0_i32 = arith.constant 0 : i32
    %c0_i32_0 = arith.constant 0 : i32
    return %arg0, %c0_i32 : i32, i32
  }
  func.func @transform_3(%arg0: i32) -> (i32, i32) {
    %c0_i32 = arith.constant 0 : i32
    %c0_i32_0 = arith.constant 0 : i32
    %c0_i32_1 = arith.constant 0 : i32
    return %c0_i32, %c0_i32_0 : i32, i32
  }
  func.func @transform_4(%arg0: i32) -> (i32, i32) {
    %c0_i32 = arith.constant 0 : i32
    %c0_i32_0 = arith.constant 0 : i32
    %c0_i32_1 = arith.constant 0 : i32
    return %c0_i32, %c0_i32_0 : i32, i32
  }
  func.func @transform_5(%arg0: i32) -> (i32, i32) {
    %c0_i32 = arith.constant 0 : i32
    %c0_i32_0 = arith.constant 0 : i32
    return %arg0, %c0_i32 : i32, i32
  }
  func.func @transform_6(%arg0: i32) -> (i32, i32) {
    %c0_i32 = arith.constant 0 : i32
    %c0_i32_0 = arith.constant 0 : i32
    return %arg0, %c0_i32 : i32, i32
  }
}

</mosaic_0001>

<bundles_post_ra>
// kernel: multiomics_forward.1
= control target key start
LH: loop header
LB: loop body
LE: loop exit
PB: predicated region body
PF: predicated region fallthrough
CT: control target
= control target key end

     0   :  { %12 = vsyncpa [#allocation3], 0  ;;  %s1155_s0 = inlined_call_operand.hbm [shape: f32[2,50], index: 0, kind: input, shape index: {}]   ;;  %s1156_s1 = inlined_call_operand.vmem [shape: f32[2,50], index: 1, kind: input, shape index: {}]   ;;  %s1157_s2 = inlined_call_operand.vmem [shape: f32[2,50], index: 2, kind: input, shape index: {}]   ;;  %s1158_s3 = inlined_call_operand.hbm [shape: bf16[576,128], index: 3, kind: input, shape index: {}]   ;;  %s1159_s4 = inlined_call_operand.vmem [shape: f32[8,128], index: 4, kind: input, shape index: {}]   ;;  %s1160_s5 = inlined_call_operand.hbm [shape: f32[2,5], index: 5, kind: output, shape index: {0}]   ;;  %s1161_s6 = inlined_call_operand.hbm [shape: f32[2,48], index: 6, kind: output, shape index: {1}]  }
   0x1   :  { %13 = vsyncpa [#allocation6], 0 }
   0x2   :  { %14 = vsyncpa [#allocation4], 0 }
   0x3   :  { %15 = vsyncpa [#allocation9], 0 }
   0x4   :  { %20 = vsyncadd [#allocation3], 96  ;;  %s984_s21 = smov [#allocation2]   ;;  %s888_s25 = scalar_lea.hbm %s1155_s0, 32 }
   0x5   :  { %s21_s22 = sshll.u32 %s984_s21, 4  ;;  %p889_p0 = scmp.ne.s32.totalorder %s1155_s0, %s888_s25  ;;  %s22_s22 = int_to_ptr.vmem [resolvable:$true] %s21_s22 }
   0x6   :  { %p892_p1 = scmp.lt.u32.totalorder %s888_s25, %s1155_s0 }
   0x8   :  { %p894_p2 = pnand %p892_p1, %p889_p0 }
   0xa   :  { %897 = shalt.err (!%p894_p2)
}
   0xb   :  { %s898_s30 = scalar_lea.vmem %s22_s22, 32  ;;  %s902_s7 = scalar_lea.vmem %s22_s22, 128 }
   0xc   :  { %p899_p3 = scmp.ne.s32.totalorder %s22_s22, %s898_s30  ;;  %p903_p4 = scmp.lt.s32.totalorder %s22_s22, %s22_s22 }
   0xd   :  { %p904_p5 = scmp.lt.s32.totalorder %s902_s7, %s898_s30 }
   0xf   :  { %p905_p6 = por %p904_p5, %p903_p4 }
  0x11   :  { %p906_p7 = pnand %p905_p6, %p899_p3 }
  0x13   :  { %909 = shalt.err (!%p906_p7)
}
  0x14   :  { %s985_s8 = smov 32   ;;  %s986_s9 = smov 2  }
  0x15   :  { %27 = dma.hbm_to_vmem [thread:$0]  %s1155_s0, 32, %s22_s22, [#allocation3], %s985_s8, %s985_s8, %s986_s9  }
  0x16   :  { %s987_s12 = smov [#allocation5]   ;;  %s910_s16 = scalar_lea.hbm %s1158_s3, 4608 }
  0x17   :  { %s37_s13 = sshll.u32 %s987_s12, 4  ;;  %p911_p8 = scmp.ne.s32.totalorder %s1158_s3, %s910_s16  ;;  %s38_s13 = int_to_ptr.vmem [resolvable:$true] %s37_s13 }
  0x18   :  { %p914_p9 = scmp.lt.u32.totalorder %s910_s16, %s1158_s3 }
  0x1a   :  { %p916_p10 = pnand %p914_p9, %p911_p8 }
  0x1c   :  { %919 = shalt.err (!%p916_p10)
}
  0x1d   :  { %s920_s21 = scalar_lea.vmem %s38_s13, 4608  ;;  %p925_p12 = scmp.lt.s32.totalorder %s38_s13, %s38_s13 }
  0x1e   :  { %p921_p11 = scmp.ne.s32.totalorder %s38_s13, %s920_s21  ;;  %p926_p13 = scmp.lt.s32.totalorder %s920_s21, %s920_s21 }
  0x20   :  { %p927_p0 = por %p926_p13, %p925_p12 }
  0x22   :  { %p928_p1 = pnand %p927_p0, %p921_p11 }
  0x24   :  { %931 = shalt.err (!%p928_p1)
}
  0x25   :  { %s988_s0 = smov 64   ;;  %s989_s22 = smov 4  }
  0x26   :  { %43 = dma.hbm_to_vmem [thread:$0]  %s1158_s3, 4608, %s38_s13, [#allocation6], %s988_s0, %s988_s0, %s989_s22  }
  0x27   :  { %976 = dma.done.wait [#allocation3], 128  }
  0x28   :  { %977 = vsyncadd [#allocation3], 4294967168 }
  0x29   :  { %978 = dma.done.wait [#allocation6], 4608  }
  0x2a   :  { %979 = vsyncadd [#allocation6], 4294962688  ;;  %v990_v0 = vmov 0.0   ;;  %vm991_vm0 = vmmov 0   ;;  %v852_v1 = vld [vmem:[#allocation5 + $0x20] sm:$0xff]   ;;  %v854_v3 = vld [vmem:[#allocation5 + $0x28] sm:$0xff]  }
  0x2b   :  { %746 = vmatprep.subr.bf16.mxu0 %v990_v0  ;;  %758 = vmatprep.subr.bf16.mxu1 %v990_v0  ;;  %v853_v2 = vld [vmem:[#allocation5] sm:$0xff]   ;;  %v855_v4 = vld [vmem:[#allocation5 + $0x8] sm:$0xff]   ;;  %v856_v5 = vld [vmem:[#allocation5 + $0x30] sm:$0xff]   ;;  %vm157_vm1 = vcmask 1040384   ;;  %vm153_vm2 = vcmask 408576   ;;  %vm623_vm3 = vcmask 392192  }
  0x2c   :  { %754 = vmatprep.mubr.msk.bf16.mxu0 %vm991_vm0, %v990_v0  ;;  %766 = vmatprep.mubr.msk.bf16.mxu1 %vm991_vm0, %v990_v0  ;;  %v858_v6 = vld [vmem:[#allocation5 + $0x38] ss:$0 sps:$4 sm:$0x11]   ;;  %v857_v7 = vld [vmem:[#allocation5 + $0x10] sm:$0xff]   ;;  %v860_v15 = vld [vmem:[#allocation5 + $0x40] sm:$0xff]   ;;  %vm625_vm4 = vcmask 39936  }
  0x2d   :  { %747 = vmatpush3.bf16.msra.mxu0 %v852_v1  ;;  %759 = vmatpush3.bf16.msra.mxu1 %v853_v2  ;;  %v859_v8 = vld [vmem:[#allocation5 + $0x18] ss:$0 sps:$4 sm:$0x11]   ;;  %v55_v9 = vld [vmem:[%s1156_s1] sm:$0xff]  ;;  %v159_v11 = vsel %vm157_vm1, %v858_v6, 0  ;;  %v864_v18 = vld [vmem:[#allocation5 + $0x60] sm:$0xff]  }
  0x2e   :  { %748 = vmatprep.subr.bf16.mxu0 %v990_v0  ;;  %760 = vmatprep.subr.bf16.mxu1 %v990_v0  ;;  %v53_v10 = vld [vmem:[#allocation2] sm:$0xff]  ;;  %v226_v13 = vsel %vm157_vm1, %v859_v8, 0  ;;  %v56_v14 = vpack.c.bf16 %v55_v9, %v55_v9  ;;  %v861_v19 = vld [vmem:[#allocation5 + $0x48] sm:$0xff]   ;;  %v862_v21 = vld [vmem:[#allocation5 + $0x50] sm:$0xff]  }
  0x2f   :  { %v863_v12 = vld [vmem:[#allocation5 + $0x58] ss:$0 sps:$4 sm:$0x11]   ;;  %v54_v17 = vpack.c.bf16 %v53_v10, %v53_v10  ;;  %v865_v20 = vld [vmem:[#allocation5 + $0x68] sm:$0xff]   ;;  %v57_v22 = vld [vmem:[%s1157_s2] sm:$0xff] }
  0x30   :  { %v293_v16 = vsel %vm157_vm1, %v863_v12, 0  ;;  %v58_v23 = vpack.c.bf16 %v57_v22, %v57_v22  ;;  %v866_v24 = vld [vmem:[#allocation5 + $0x70] sm:$0xff]   ;;  %v867_v25 = vld [vmem:[#allocation5 + $0x78] sm:$0xff]   ;;  %v868_v26 = vld [vmem:[#allocation5 + $0x80] sm:$0xff]  }
  0x31   :  { %749 = vmatpush3.bf16.msra.mxu0 %v854_v3  ;;  %761 = vmatpush3.bf16.msra.mxu1 %v855_v4  ;;  %v869_v27 = vld [vmem:[#allocation5 + $0x88] sm:$0xff]   ;;  %v870_v28 = vld [vmem:[#allocation5 + $0x90] sm:$0xff]   ;;  %v871_v29 = vld [vmem:[#allocation5 + $0x98] sm:$0xff]  }
  0x32   :  { %750 = vmatprep.subr.bf16.mxu0 %v990_v0  ;;  %762 = vmatprep.subr.bf16.mxu1 %v990_v0  ;;  %v872_v30 = vld [vmem:[#allocation5 + $0xa0] sm:$0xff]   ;;  %v873_v31 = vld [vmem:[#allocation5 + $0xa8] sm:$0xff]   ;;  %v874_v32 = vld [vmem:[#allocation5 + $0xb0] sm:$0xff]  }
  0x33   :  { %v875_v33 = vld [vmem:[#allocation5 + $0xb8] sm:$0xff]   ;;  %v876_v34 = vld [vmem:[#allocation5 + $0xc0] sm:$0xff]   ;;  %v877_v35 = vld [vmem:[#allocation5 + $0xc8] sm:$0xff]  }
  0x34   :  { %v676_v45 = vld [vmem:[%s1159_s4] ss:$0 sm:$0xff]  ;;  %v879_v55 = vld [vmem:[#allocation5 + $0xd8] sm:$0xff]   ;;  %v880_v56 = vld [vmem:[#allocation5 + $0xe0] sm:$0xff]  }
  0x35   :  { %751 = vmatpush3.bf16.msra.mxu0 %v856_v5  ;;  %763 = vmatpush3.bf16.msra.mxu1 %v857_v7  ;;  %v878_v54 = vld [vmem:[#allocation5 + $0xd0] sm:$0xff]   ;;  %v881_v57 = vld [vmem:[#allocation5 + $0xe8] sm:$0xff]   ;;  %v883_v59 = vld [vmem:[#allocation5 + $0xf8] sm:$0xff]  }
  0x36   :  { %752 = vmatprep.subr.bf16.mxu0 %v990_v0  ;;  %764 = vmatprep.subr.bf16.mxu1 %v990_v0  ;;  %v882_v58 = vld [vmem:[#allocation5 + $0xf0] sm:$0xff]   ;;  %v884_v60 = vld [vmem:[#allocation5 + $0x100] sm:$0xff]   ;;  %v885_v61 = vld [vmem:[#allocation5 + $0x108] sm:$0xff]  }
  0x37   :  { %v677_v62 = vld [vmem:[%s1159_s4 + $0x1] ss:$0 sm:$0xff]  ;;  %v887_v8 = vld [vmem:[#allocation5 + $0x118] sm:$0xff]   ;;  %v686_v9 = vld [vmem:[%s1159_s4 + $0x2] ss:$0 sm:$0xff] }
  0x38   :  { %v886_v7 = vld [vmem:[#allocation5 + $0x110] sm:$0xff]  }
  0x39   :  { %753 = vmatpush3.bf16.msra.mxu0 %v159_v11  ;;  %765 = vmatpush3.bf16.msra.mxu1 %v226_v13 }
  0x3a   :  { %770 = vmatprep.subr.bf16.mxu0 %v990_v0  ;;  %782 = vmatprep.subr.bf16.mxu1 %v990_v0 }
  0x3c   :  { %755 = vmatmul.mubr.msk.bf16.vlgmr.msra.gmra.mrb[0].mxu0 %vm153_vm2, %v56_v14  ;;  %767 = vmatmul.mubr.msk.bf16.vlgmr.msra.gmra.mrb[0].mxu1 %vm153_vm2, %v54_v17  ;;  %v695_v17 = vld [vmem:[%s1159_s4 + $0x3] ss:$0 sm:$0xff] }
  0x3d   :  { %771 = vmatpush3.bf16.msra.mxu0 %v860_v15  ;;  %778 = vmatprep.mubr.msk.bf16.mxu0 %vm991_vm0, %v990_v0 }
  0x3e   :  { %772 = vmatprep.subr.bf16.mxu0 %v990_v0  ;;  %783 = vmatpush3.bf16.msra.mxu1 %v864_v18 }
  0x3f   :  { %798 = vmatprep.mubr.msk.bf16.mxu1 %vm991_vm0, %v990_v0  ;;  %784 = vmatprep.subr.bf16.mxu1 %v990_v0 }
  0x41   :  { %773 = vmatpush3.bf16.msra.mxu0 %v861_v19 }
  0x42   :  { %774 = vmatprep.subr.bf16.mxu0 %v990_v0  ;;  %785 = vmatpush3.bf16.msra.mxu1 %v865_v20 }
  0x43   :  { %786 = vmatprep.subr.bf16.mxu1 %v990_v0 }
  0x45   :  { %775 = vmatpush3.bf16.msra.mxu0 %v862_v21 }
  0x46   :  { %776 = vmatprep.subr.bf16.mxu0 %v990_v0  ;;  %787 = vmatpush3.bf16.msra.mxu1 %v866_v24 }
  0x47   :  { %788 = vmatprep.subr.bf16.mxu1 %v990_v0 }
  0x49   :  { %777 = vmatpush3.bf16.msra.mxu0 %v293_v16 }
  0x4a   :  { %802 = vmatprep.subr.bf16.mxu0 %v990_v0  ;;  %789 = vmatpush3.bf16.msra.mxu1 %v867_v25 }
  0x4b   :  { %790 = vmatprep.subr.bf16.mxu1 %v990_v0 }
  0x4c   :  { %779 = vmatmul.mubr.msk.bf16.vlgmr.msra.gmra.mrb[4].mxu0 %vm153_vm2, %v58_v23 }
  0x4d   :  { %818 = vmatprep.mubr.msk.bf16.mxu0 %vm991_vm0, %v990_v0  ;;  %803 = vmatpush3.bf16.msra.mxu0 %v872_v30 }
  0x4e   :  { %791 = vmatpush3.bf16.msra.mxu1 %v868_v26  ;;  %804 = vmatprep.subr.bf16.mxu0 %v990_v0 }
  0x4f   :  { %792 = vmatprep.subr.bf16.mxu1 %v990_v0 }
  0x51   :  { %805 = vmatpush3.bf16.msra.mxu0 %v873_v31 }
  0x52   :  { %793 = vmatpush3.bf16.msra.mxu1 %v869_v27  ;;  %806 = vmatprep.subr.bf16.mxu0 %v990_v0 }
  0x53   :  { %794 = vmatprep.subr.bf16.mxu1 %v990_v0 }
  0x55   :  { %807 = vmatpush3.bf16.msra.mxu0 %v874_v32 }
  0x56   :  { %795 = vmatpush3.bf16.msra.mxu1 %v870_v28  ;;  %808 = vmatprep.subr.bf16.mxu0 %v990_v0 }
  0x57   :  { %796 = vmatprep.subr.bf16.mxu1 %v990_v0 }
  0x59   :  { %809 = vmatpush3.bf16.msra.mxu0 %v875_v33 }
  0x5a   :  { %797 = vmatpush3.bf16.msra.mxu1 %v871_v29  ;;  %810 = vmatprep.subr.bf16.mxu0 %v990_v0 }
  0x5b   :  { %822 = vmatprep.subr.bf16.mxu1 %v990_v0 }
  0x5d   :  { %811 = vmatpush3.bf16.msra.mxu0 %v876_v34 }
  0x5e   :  { %812 = vmatprep.subr.bf16.mxu0 %v990_v0 }
  0x61   :  { %813 = vmatpush3.bf16.msra.mxu0 %v877_v35 }
  0x62   :  { %814 = vmatprep.subr.bf16.mxu0 %v990_v0 }
  0x65   :  { %815 = vmatpush3.bf16.msra.mxu0 %v878_v54 }
  0x66   :  { %816 = vmatprep.subr.bf16.mxu0 %v990_v0 }
  0x69   :  { %817 = vmatpush3.bf16.msra.mxu0 %v879_v55 }
 0x10f   :  { %v195_v36 = vpop.f32.mrb[0].mxu0  ;;  %v262_v38 = vpop.f32.mrb[0].mxu1 }
 0x110   :  { %v756_v37 = vpop.f32.mrb[1].mxu0  ;;  %v263_v39 = vadd.f32 %v262_v38, %v195_v36  ;;  %v768_v41 = vpop.f32.mrb[1].mxu1 }
 0x111   :  { %v198_v40 = vpop.f32.mrb[2].mxu0  ;;  %v265_v43 = vpop.f32.mrb[2].mxu1 }
 0x112   :  { %v757_v42 = vpop.f32.mrb[3].mxu0  ;;  %v769_v44 = vpop.f32.mrb[3].mxu1 }
 0x11f   :  { %v329_v46 = vpop.f32.mrb[4].mxu0 }
 0x120   :  { %v335_v47 = vadd.f32 %v329_v46, %v263_v39  ;;  %v780_v48 = vpop.f32.mrb[5].mxu0 }
 0x121   :  { %v332_v49 = vpop.f32.mrb[6].mxu0 }
 0x122   :  { %v340_v50 = vadd.f32 %v676_v45, %v335_v47  ;;  %v781_v51 = vpop.f32.mrb[7].mxu0 }
 0x124   :  { %v341_v52 = vmax.f32 %v340_v50, 0.0 }
 0x126   :  { %v342_v53 = vpack.c.bf16 %v341_v52, %v341_v52 }
 0x128   :  { %799 = vmatmul.mubr.bf16.vlgmr.msra.gmra.mrb[4].mxu1 %v342_v53 }
 0x129   :  { %838 = vmatprep.mubr.msk.bf16.mxu1 %vm991_vm0, %v990_v0  ;;  %823 = vmatpush3.bf16.msra.mxu1 %v880_v56 }
 0x12a   :  { %824 = vmatprep.subr.bf16.mxu1 %v990_v0 }
 0x12d   :  { %825 = vmatpush3.bf16.msra.mxu1 %v881_v57 }
 0x12e   :  { %826 = vmatprep.subr.bf16.mxu1 %v990_v0 }
 0x131   :  { %827 = vmatpush3.bf16.msra.mxu1 %v882_v58 }
 0x132   :  { %828 = vmatprep.subr.bf16.mxu1 %v990_v0 }
 0x135   :  { %829 = vmatpush3.bf16.msra.mxu1 %v883_v59 }
 0x136   :  { %830 = vmatprep.subr.bf16.mxu1 %v990_v0 }
 0x139   :  { %831 = vmatpush3.bf16.msra.mxu1 %v884_v60 }
 0x13a   :  { %832 = vmatprep.subr.bf16.mxu1 %v990_v0 }
 0x13d   :  { %833 = vmatpush3.bf16.msra.mxu1 %v885_v61 }
 0x13e   :  { %834 = vmatprep.subr.bf16.mxu1 %v990_v0 }
 0x141   :  { %835 = vmatpush3.bf16.msra.mxu1 %v886_v7 }
 0x142   :  { %836 = vmatprep.subr.bf16.mxu1 %v990_v0 }
 0x145   :  { %837 = vmatpush3.bf16.msra.mxu1 %v887_v8 }
 0x1fb   :  { %v429_v63 = vpop.f32.mrb[4].mxu1 }
 0x1fc   :  { %v430_v1 = vadd.f32 %v677_v62, %v429_v63  ;;  %v800_v2 = vpop.f32.mrb[5].mxu1 }
 0x1fd   :  { %v432_v3 = vpop.f32.mrb[6].mxu1 }
 0x1fe   :  { %v435_v4 = vmax.f32 %v430_v1, 0.0  ;;  %v801_v5 = vpop.f32.mrb[7].mxu1 }
 0x200   :  { %v436_v6 = vpack.c.bf16 %v435_v4, %v435_v4  ;;  %624 = vst.msk [vmem:[#allocation8] sm:$0xff] %vm623_vm3, %v435_v4 }
 0x202   :  { %819 = vmatmul.mubr.bf16.vlgmr.msra.gmra.mrb[8].mxu0 %v436_v6 }
 0x2d5   :  { %v523_v10 = vpop.f32.mrb[8].mxu0 }
 0x2d6   :  { %v524_v11 = vadd.f32 %v686_v9, %v523_v10  ;;  %v820_v12 = vpop.f32.mrb[9].mxu0 }
 0x2d7   :  { %v526_v13 = vpop.f32.mrb[10].mxu0 }
 0x2d8   :  { %v529_v14 = vmax.f32 %v524_v11, 0.0  ;;  %v821_v15 = vpop.f32.mrb[11].mxu0 }
 0x2da   :  { %v530_v16 = vpack.c.bf16 %v529_v14, %v529_v14 }
 0x2dc   :  { %839 = vmatmul.mubr.bf16.vlgmr.msra.gmra.mrb[8].mxu1 %v530_v16 }
 0x3af   :  { %v617_v18 = vpop.f32.mrb[8].mxu1 }
 0x3b0   :  { %v618_v0 = vadd.f32 %v695_v17, %v617_v18  ;;  %v840_v19 = vpop.f32.mrb[9].mxu1 }
 0x3b1   :  { %v620_v20 = vpop.f32.mrb[10].mxu1 }
 0x3b2   :  { %626 = vst.msk [vmem:[#allocation7] sm:$0xff] %vm625_vm4, %v618_v0  ;;  %v841_v21 = vpop.f32.mrb[11].mxu1 }
 0x3b3   :  { %631 = vsyncadd [#allocation4], 96  ;;  %s992_s12 = smov [#allocation7]  }
 0x3b4   :  { %s632_s13 = sshll.u32 %s992_s12, 4  ;;  %s633_s13 = int_to_ptr.vmem [resolvable:$true] %s632_s13 }
 0x3b5   :  { %s932_s14 = scalar_lea.vmem %s633_s13, 32  ;;  %s936_s15 = scalar_lea.vmem %s633_s13, 128 }
 0x3b6   :  { %p933_p2 = scmp.ne.s32.totalorder %s633_s13, %s932_s14  ;;  %p937_p3 = scmp.lt.s32.totalorder %s633_s13, %s633_s13 }
 0x3b7   :  { %p938_p4 = scmp.lt.s32.totalorder %s936_s15, %s932_s14 }
 0x3b9   :  { %p939_p5 = por %p938_p4, %p937_p3 }
 0x3bb   :  { %p940_p6 = pnand %p939_p5, %p933_p2 }
 0x3bd   :  { %943 = shalt.err (!%p940_p6)
}
 0x3be   :  { %s944_s17 = scalar_lea.hbm %s1160_s5, 32 }
 0x3bf   :  { %p945_p7 = scmp.ne.s32.totalorder %s1160_s5, %s944_s17  ;;  %p948_p8 = scmp.lt.u32.totalorder %s944_s17, %s1160_s5 }
 0x3c1   :  { %p950_p9 = pnand %p948_p8, %p945_p7 }
 0x3c3   :  { %953 = shalt.err (!%p950_p9)
}
 0x3c4   :  { %638 = dma.vmem_to_hbm [thread:$0]  %s633_s13, 32, %s1160_s5, [#allocation4], %s985_s8, %s985_s8, %s986_s9  }
 0x3c5   :  { %643 = vsyncadd [#allocation9], 96  ;;  %s993_s23 = smov [#allocation8]  }
 0x3c6   :  { %s644_s24 = sshll.u32 %s993_s23, 4  ;;  %s645_s24 = int_to_ptr.vmem [resolvable:$true] %s644_s24 }
 0x3c7   :  { %s954_s3 = scalar_lea.vmem %s645_s24, 32  ;;  %s958_s25 = scalar_lea.vmem %s645_s24, 128 }
 0x3c8   :  { %p955_p10 = scmp.ne.s32.totalorder %s645_s24, %s954_s3  ;;  %p959_p11 = scmp.lt.s32.totalorder %s645_s24, %s645_s24 }
 0x3c9   :  { %p960_p12 = scmp.lt.s32.totalorder %s958_s25, %s954_s3 }
 0x3cb   :  { %p961_p13 = por %p960_p12, %p959_p11 }
 0x3cd   :  { %p962_p0 = pnand %p961_p13, %p955_p10 }
 0x3cf   :  { %965 = shalt.err (!%p962_p0)
}
 0x3d0   :  { %s966_s2 = scalar_lea.hbm %s1161_s6, 32 }
 0x3d1   :  { %p967_p1 = scmp.ne.s32.totalorder %s1161_s6, %s966_s2  ;;  %p970_p2 = scmp.lt.u32.totalorder %s966_s2, %s1161_s6 }
 0x3d3   :  { %p972_p3 = pnand %p970_p2, %p967_p1 }
 0x3d5   :  { %975 = shalt.err (!%p972_p3)
}
 0x3d6   :  { %650 = dma.vmem_to_hbm [thread:$0]  %s645_s24, 32, %s1161_s6, [#allocation9], %s985_s8, %s985_s8, %s986_s9  }
 0x3d7   :  { %980 = dma.done.wait [#allocation4], 128  }
 0x3d8   :  { %981 = vsyncadd [#allocation4], 4294967168 }
 0x3d9   :  { %982 = dma.done.wait [#allocation9], 128  }
 0x3da   :  { %983 = vsyncadd [#allocation9], 4294967168 }
 0x3db   :  { %657 = vsyncpa [#allocation3], 1 }
 0x3dc   :  { %658 = vsyncpa [#allocation6], 1 }
 0x3dd   :  { %659 = vsyncpa [#allocation4], 1 }
 0x3de   :  { %660 = vsyncpa [#allocation9], 1 }

</bundles_post_ra>
